<compile_context>
chip_gen: v7x
topology: tpu7x:2x2x1
jax: 0.10.0
libtpu: 0.0.40
codegen_flags: <defaults>
</compile_context>

<pallas_src>
import jax
import jax.numpy as jnp
from jax import lax
from jax.experimental import pallas as pl
from jax.experimental.pallas import tpu as pltpu


def _moco_head_kernel(x_ref, w1_ref, b1_ref, w2_ref, b2_ref, o_ref):
    # x:  (tb, D_in)       bf16
    # w1: (H, D_in)        bf16   (PyTorch layout; contract on axis 1)
    # b1: (1, H)           f32
    # w2: (D_out_pad, H)   bf16   (PyTorch layout; contract on axis 1)
    # b2: (1, D_out_pad)   f32
    x = x_ref[...]

    # Linear 1: x @ w1.T on the MXU with f32 accumulation; bias + ReLU in f32.
    h = lax.dot_general(
        x, w1_ref[...],
        dimension_numbers=(((1,), (1,)), ((), ())),
        preferred_element_type=jnp.float32,
    )
    h = jnp.maximum(h + b1_ref[...], 0.0)

    # Linear 2: h @ w2.T — feed bf16 back into the MXU, accumulate in f32.
    y = lax.dot_general(
        h.astype(jnp.bfloat16), w2_ref[...],
        dimension_numbers=(((1,), (1,)), ((), ())),
        preferred_element_type=jnp.float32,
    )
    y = y + b2_ref[...]

    # F.normalize(y, dim=1) == y / max(||y||, 1e-12) == y * rsqrt(max(||y||^2, 1e-24)).
    sq = jnp.sum(y * y, axis=1, keepdims=True)
    o_ref[...] = (y * lax.rsqrt(jnp.maximum(sq, 1e-24))).astype(o_ref.dtype)


def _round_up(x, m):
    return ((x + m - 1) // m) * m


def _pick_block_b(B, d_in, hidden, d_out_pad, out_itemsize):
    """Largest MXU-aligned row tile whose footprint fits a conservative VMEM budget."""
    budget = 32 * 1024 * 1024  # fits every generation's scoped VMEM once requested
    # Grid-invariant operands (bf16 weights, f32 biases); assume worst-case 2x buffering.
    resident = 2 * (2 * (hidden * d_in + d_out_pad * hidden) + 4 * (hidden + d_out_pad))
    # Per-row bytes: 2x-buffered bf16 x tile + 2x-buffered out tile
    # + in-kernel intermediates (f32 h, bf16 h, f32 y).
    per_row = (2 * 2 * d_in) + (2 * out_itemsize * d_out_pad) + 6 * hidden + 4 * d_out_pad
    cap = max((budget - resident) // per_row, 16)
    if B >= 512 and cap >= 256:
        align = 256      # fill the 2x256x256 MXU on v6e/v7x
    elif B >= 256 and cap >= 128:
        align = 128      # v5e MXU tile
    else:
        align = 16       # bf16 sublane packing minimum
    half_b = (B + 1) // 2  # keep >= 2 grid steps when B is large enough (v7x: 2 TCs)
    block_b = (min(cap, max(half_b, align)) // align) * align
    return max(int(block_b), align)


def _vmem_limit_bytes(block_b, d_in, hidden, d_out_pad, out_itemsize):
    resident = 2 * (2 * (hidden * d_in + d_out_pad * hidden) + 4 * (hidden + d_out_pad))
    tiles = block_b * ((2 * 2 * d_in) + (2 * out_itemsize * d_out_pad)
                       + 6 * hidden + 4 * d_out_pad)
    return int(min(max(resident + tiles + (4 << 20), 16 << 20), 48 << 20))


def moco_projection_head(x, w1, b1, w2, b2, *, block_b=None):
    """Forward pass of MoCoProjectionHead.

    x:  (B, input_dim)
    w1: (hidden_dim, input_dim), b1: (hidden_dim,)      (PyTorch nn.Linear layout)
    w2: (output_dim, hidden_dim), b2: (output_dim,)
    Returns (B, output_dim) in x.dtype.
    """
    B, d_in = x.shape
    hidden = w1.shape[0]
    d_out = w2.shape[0]
    out_dtype = x.dtype
    out_itemsize = jnp.dtype(out_dtype).itemsize

    # Lane-dense output: pad the output feature dim to a multiple of 128.
    d_out_pad = _round_up(d_out, 128)

    if block_b is None:
        block_b = _pick_block_b(B, d_in, hidden, d_out_pad, out_itemsize)
    block_b = max(int(block_b), 1)

    # Pad the batch so every row is covered (no silently-dropped tail tile).
    B_pad = _round_up(B, block_b)

    # NOTE: in production the bf16 casts / zero-padding of the weights would be
    # done once at parameter-load time, not per call.
    x_p = x
    if B_pad != B:
        x_p = jnp.pad(x_p, ((0, B_pad - B), (0, 0)))
    x_p = x_p.astype(jnp.bfloat16)

    w1_b = w1.astype(jnp.bfloat16)                       # (H, D_in), PyTorch layout
    b1_r = b1.astype(jnp.float32).reshape(1, hidden)
    w2_b = w2.astype(jnp.bfloat16)                       # (D_out, H), PyTorch layout
    b2_r = b2.astype(jnp.float32).reshape(1, d_out)
    if d_out_pad != d_out:
        w2_b = jnp.pad(w2_b, ((0, d_out_pad - d_out), (0, 0)))
        b2_r = jnp.pad(b2_r, ((0, 0), (0, d_out_pad - d_out)))

    grid = (B_pad // block_b,)
    vmem_limit = _vmem_limit_bytes(block_b, d_in, hidden, d_out_pad, out_itemsize)

    def build_and_run(single_buffer_weights):
        def const_spec(shape):
            kwargs = {}
            if single_buffer_weights:
                # Grid-invariant operands: no need to double-buffer them.
                kwargs["pipeline_mode"] = pl.Buffered(1)
            return pl.BlockSpec(shape, lambda i: (0, 0), **kwargs)

        call = pl.pallas_call(
            _moco_head_kernel,
            out_shape=jax.ShapeDtypeStruct((B_pad, d_out_pad), out_dtype),
            grid_spec=pltpu.PrefetchScalarGridSpec(
                num_scalar_prefetch=0,
                grid=grid,
                in_specs=[
                    pl.BlockSpec((block_b, d_in), lambda i: (i, 0)),
                    const_spec((hidden, d_in)),
                    const_spec((1, hidden)),
                    const_spec((d_out_pad, hidden)),
                    const_spec((1, d_out_pad)),
                ],
                out_specs=pl.BlockSpec((block_b, d_out_pad), lambda i: (i, 0)),
            ),
            compiler_params=pltpu.CompilerParams(
                dimension_semantics=("parallel",),
                vmem_limit_bytes=vmem_limit,
            ),
        )
        return call(x_p, w1_b, b1_r, w2_b, b2_r)

    try:
        out_pad = build_and_run(True)
    except Exception:
        # Some Pallas versions reject Buffered(1); default buffering is
        # functionally identical (just uses a bit more VMEM).
        out_pad = build_and_run(False)

    return out_pad[:B, :d_out]


def _reference(x, w1, b1, w2, b2):
    # Mirrors the kernel's mixed precision: bf16 MXU inputs, f32 accumulation.
    xb = x.astype(jnp.bfloat16)
    h = jnp.dot(xb, w1.astype(jnp.bfloat16).T, preferred_element_type=jnp.float32)
    h = jnp.maximum(h + b1.astype(jnp.float32), 0.0)
    y = jnp.dot(h.astype(jnp.bfloat16), w2.astype(jnp.bfloat16).T,
                preferred_element_type=jnp.float32)
    y = y + b2.astype(jnp.float32)
    n = jnp.sqrt(jnp.sum(y * y, axis=1, keepdims=True))
    return (y / jnp.maximum(n, 1e-12)).astype(x.dtype)


if __name__ == "__main__":
    # Small shapes consistent with the module: Linear(D_in->H), ReLU, Linear(H->D_out)
    B, D_IN, HIDDEN, D_OUT = 8, 32, 64, 16

    key = jax.random.PRNGKey(0)
    kx, k1, kb1, k2, kb2 = jax.random.split(key, 5)

    x = jax.random.normal(kx, (B, D_IN), dtype=jnp.float32)
    # PyTorch nn.Linear layout: (out_features, in_features)
    w1 = jax.random.normal(k1, (HIDDEN, D_IN), dtype=jnp.float32) * 0.05
    b1 = jax.random.normal(kb1, (HIDDEN,), dtype=jnp.float32) * 0.05
    w2 = jax.random.normal(k2, (D_OUT, HIDDEN), dtype=jnp.float32) * 0.05
    b2 = jax.random.normal(kb2, (D_OUT,), dtype=jnp.float32) * 0.05

    out = moco_projection_head(x, w1, b1, w2, b2)
    out = jax.block_until_ready(out)

    ref = _reference(x, w1, b1, w2, b2)
    assert out.shape == (B, D_OUT)
    assert jnp.allclose(out, ref, atol=2e-2, rtol=2e-2), "mismatch vs reference"
    norms = jnp.sqrt(jnp.sum(out.astype(jnp.float32) ** 2, axis=1))
    assert jnp.allclose(norms, 1.0, atol=1e-2), "rows not L2-normalized"

    print("KERNEL_OK")
</pallas_src>

<mosaic_0001>
module attributes {stable_mosaic.version = 11 : i64} {
  func.func @_moco_head_kernel(%arg0: i32, %arg1: memref<16x32xbf16, #tpu.memory_space<vmem>>, %arg2: memref<64x32xbf16, #tpu.memory_space<vmem>>, %arg3: memref<1x64xf32, #tpu.memory_space<vmem>>, %arg4: memref<128x64xbf16, #tpu.memory_space<vmem>>, %arg5: memref<1x128xf32, #tpu.memory_space<vmem>>, %arg6: memref<16x128xf32, #tpu.memory_space<vmem>>) attributes {dimension_semantics = [#tpu.dimension_semantics<parallel>], iteration_bounds = array<i64: 1>, scalar_prefetch = 0 : i64, scratch_operands = 0 : i64, tpu.core_type = #tpu.core_type<tc>, window_params = [{transform_indices = @transform_0, window_bounds = array<i64: 16, 32>}, {pipeline_mode = #tpu.pipeline_mode<synchronous>, transform_indices = @transform_1, window_bounds = array<i64: 64, 32>}, {pipeline_mode = #tpu.pipeline_mode<synchronous>, transform_indices = @transform_2, window_bounds = array<i64: 1, 64>}, {pipeline_mode = #tpu.pipeline_mode<synchronous>, transform_indices = @transform_3, window_bounds = array<i64: 128, 64>}, {pipeline_mode = #tpu.pipeline_mode<synchronous>, transform_indices = @transform_4, window_bounds = array<i64: 1, 128>}, {transform_indices = @transform_5, window_bounds = array<i64: 16, 128>}]} {
    %c0 = arith.constant 0 : index
    %c0_0 = arith.constant 0 : index
    %0 = vector.load %arg1[%c0, %c0_0] : memref<16x32xbf16, #tpu.memory_space<vmem>>, vector<16x32xbf16>
    %c0_1 = arith.constant 0 : index
    %c0_2 = arith.constant 0 : index
    %1 = vector.load %arg2[%c0_1, %c0_2] : memref<64x32xbf16, #tpu.memory_space<vmem>>, vector<64x32xbf16>
    %cst = arith.constant dense<0.000000e+00> : vector<16x64xf32>
    %2 = tpu.matmul %0, %1, %cst {dimension_numbers = #tpu.dot_dimension_numbers<[1], [1], [0], [0], [0, 0, 1, 0], [], []>} : vector<16x32xbf16>, vector<64x32xbf16>, vector<16x64xf32> -> vector<16x64xf32>
    %c0_3 = arith.constant 0 : index
    %c0_4 = arith.constant 0 : index
    %3 = vector.load %arg3[%c0_3, %c0_4] : memref<1x64xf32, #tpu.memory_space<vmem>>, vector<1x64xf32>
    %4 = vector.broadcast %3 : vector<1x64xf32> to vector<16x64xf32>
    %5 = arith.addf %2, %4 : vector<16x64xf32>
    %cst_5 = arith.constant 0.000000e+00 : f32
    %6 = vector.broadcast %cst_5 : f32 to vector<16x64xf32>
    %7 = arith.maximumf %5, %6 : vector<16x64xf32>
    %8 = arith.truncf %7 : vector<16x64xf32> to vector<16x64xbf16>
    %c0_6 = arith.constant 0 : index
    %c0_7 = arith.constant 0 : index
    %9 = vector.load %arg4[%c0_6, %c0_7] : memref<128x64xbf16, #tpu.memory_space<vmem>>, vector<128x64xbf16>
    %cst_8 = arith.constant dense<0.000000e+00> : vector<16x128xf32>
    %10 = tpu.matmul %8, %9, %cst_8 {dimension_numbers = #tpu.dot_dimension_numbers<[1], [1], [0], [0], [0, 0, 1, 0], [], []>} : vector<16x64xbf16>, vector<128x64xbf16>, vector<16x128xf32> -> vector<16x128xf32>
    %c0_9 = arith.constant 0 : index
    %c0_10 = arith.constant 0 : index
    %11 = vector.load %arg5[%c0_9, %c0_10] : memref<1x128xf32, #tpu.memory_space<vmem>>, vector<1x128xf32>
    %12 = vector.broadcast %11 : vector<1x128xf32> to vector<16x128xf32>
    %13 = arith.addf %10, %12 : vector<16x128xf32>
    %14 = arith.mulf %13, %13 : vector<16x128xf32>
    %cst_11 = arith.constant dense<0.000000e+00> : vector<16xf32>
    %15 = vector.multi_reduction <add>, %14, %cst_11 [1] : vector<16x128xf32> to vector<16xf32>
    %16 = vector.shape_cast %15 : vector<16xf32> to vector<16x1xf32>
    %cst_12 = arith.constant 1.000000e-24 : f32
    %17 = vector.broadcast %cst_12 : f32 to vector<16x1xf32>
    %18 = arith.maximumf %16, %17 : vector<16x1xf32>
    %19 = math.rsqrt %18 : vector<16x1xf32>
    %20 = vector.broadcast %19 : vector<16x1xf32> to vector<16x128xf32>
    %21 = arith.mulf %13, %20 : vector<16x128xf32>
    %c0_13 = arith.constant 0 : index
    %c0_14 = arith.constant 0 : index
    %22 = vector.load %arg6[%c0_13, %c0_14] : memref<16x128xf32, #tpu.memory_space<vmem>>, vector<16x128xf32>
    tpu.vector_store %arg6[%c0_13, %c0_14], %21 {strides = array<i32>} : memref<16x128xf32, #tpu.memory_space<vmem>>, vector<16x128xf32>,
    return
  }
  func.func @transform_0(%arg0: i32) -> (i32, i32) {
    %c0_i32 = arith.constant 0 : i32
    %c0_i32_0 = arith.constant 0 : i32
    return %arg0, %c0_i32 : i32, i32
  }
  func.func @transform_1(%arg0: i32) -> (i32, i32) {
    %c0_i32 = arith.constant 0 : i32
    %c0_i32_0 = arith.constant 0 : i32
    %c0_i32_1 = arith.constant 0 : i32
    return %c0_i32, %c0_i32_0 : i32, i32
  }
  func.func @transform_2(%arg0: i32) -> (i32, i32) {
    %c0_i32 = arith.constant 0 : i32
    %c0_i32_0 = arith.constant 0 : i32
    %c0_i32_1 = arith.constant 0 : i32
    return %c0_i32, %c0_i32_0 : i32, i32
  }
  func.func @transform_3(%arg0: i32) -> (i32, i32) {
    %c0_i32 = arith.constant 0 : i32
    %c0_i32_0 = arith.constant 0 : i32
    %c0_i32_1 = arith.constant 0 : i32
    return %c0_i32, %c0_i32_0 : i32, i32
  }
  func.func @transform_4(%arg0: i32) -> (i32, i32) {
    %c0_i32 = arith.constant 0 : i32
    %c0_i32_0 = arith.constant 0 : i32
    %c0_i32_1 = arith.constant 0 : i32
    return %c0_i32, %c0_i32_0 : i32, i32
  }
  func.func @transform_5(%arg0: i32) -> (i32, i32) {
    %c0_i32 = arith.constant 0 : i32
    %c0_i32_0 = arith.constant 0 : i32
    return %arg0, %c0_i32 : i32, i32
  }
}

module attributes {stable_mosaic.version = 11 : i64} {
  func.func @_moco_head_kernel(%arg0: i32, %arg1: memref<16x32xbf16, #tpu.memory_space<vmem>>, %arg2: memref<64x32xbf16, #tpu.memory_space<vmem>>, %arg3: memref<1x64xf32, #tpu.memory_space<vmem>>, %arg4: memref<128x64xbf16, #tpu.memory_space<vmem>>, %arg5: memref<1x128xf32, #tpu.memory_space<vmem>>, %arg6: memref<16x128xf32, #tpu.memory_space<vmem>>) attributes {dimension_semantics = [#tpu.dimension_semantics<parallel>], iteration_bounds = array<i64: 1>, scalar_prefetch = 0 : i64, scratch_operands = 0 : i64, tpu.core_type = #tpu.core_type<tc>, window_params = [{transform_indices = @transform_0, window_bounds = array<i64: 16, 32>}, {pipeline_mode = #tpu.pipeline_mode<synchronous>, transform_indices = @transform_1, window_bounds = array<i64: 64, 32>}, {pipeline_mode = #tpu.pipeline_mode<synchronous>, transform_indices = @transform_2, window_bounds = array<i64: 1, 64>}, {pipeline_mode = #tpu.pipeline_mode<synchronous>, transform_indices = @transform_3, window_bounds = array<i64: 128, 64>}, {pipeline_mode = #tpu.pipeline_mode<synchronous>, transform_indices = @transform_4, window_bounds = array<i64: 1, 128>}, {transform_indices = @transform_5, window_bounds = array<i64: 16, 128>}]} {
    %c0 = arith.constant 0 : index
    %c0_0 = arith.constant 0 : index
    %0 = vector.load %arg1[%c0, %c0_0] : memref<16x32xbf16, #tpu.memory_space<vmem>>, vector<16x32xbf16>
    %c0_1 = arith.constant 0 : index
    %c0_2 = arith.constant 0 : index
    %1 = vector.load %arg2[%c0_1, %c0_2] : memref<64x32xbf16, #tpu.memory_space<vmem>>, vector<64x32xbf16>
    %cst = arith.constant dense<0.000000e+00> : vector<16x64xf32>
    %2 = tpu.matmul %0, %1, %cst {dimension_numbers = #tpu.dot_dimension_numbers<[1], [1], [0], [0], [0, 0, 1, 0], [], []>} : vector<16x32xbf16>, vector<64x32xbf16>, vector<16x64xf32> -> vector<16x64xf32>
    %c0_3 = arith.constant 0 : index
    %c0_4 = arith.constant 0 : index
    %3 = vector.load %arg3[%c0_3, %c0_4] : memref<1x64xf32, #tpu.memory_space<vmem>>, vector<1x64xf32>
    %4 = vector.broadcast %3 : vector<1x64xf32> to vector<16x64xf32>
    %5 = arith.addf %2, %4 : vector<16x64xf32>
    %cst_5 = arith.constant 0.000000e+00 : f32
    %6 = vector.broadcast %cst_5 : f32 to vector<16x64xf32>
    %7 = arith.maximumf %5, %6 : vector<16x64xf32>
    %8 = arith.truncf %7 : vector<16x64xf32> to vector<16x64xbf16>
    %c0_6 = arith.constant 0 : index
    %c0_7 = arith.constant 0 : index
    %9 = vector.load %arg4[%c0_6, %c0_7] : memref<128x64xbf16, #tpu.memory_space<vmem>>, vector<128x64xbf16>
    %cst_8 = arith.constant dense<0.000000e+00> : vector<16x128xf32>
    %10 = tpu.matmul %8, %9, %cst_8 {dimension_numbers = #tpu.dot_dimension_numbers<[1], [1], [0], [0], [0, 0, 1, 0], [], []>} : vector<16x64xbf16>, vector<128x64xbf16>, vector<16x128xf32> -> vector<16x128xf32>
    %c0_9 = arith.constant 0 : index
    %c0_10 = arith.constant 0 : index
    %11 = vector.load %arg5[%c0_9, %c0_10] : memref<1x128xf32, #tpu.memory_space<vmem>>, vector<1x128xf32>
    %12 = vector.broadcast %11 : vector<1x128xf32> to vector<16x128xf32>
    %13 = arith.addf %10, %12 : vector<16x128xf32>
    %14 = arith.mulf %13, %13 : vector<16x128xf32>
    %cst_11 = arith.constant dense<0.000000e+00> : vector<16xf32>
    %15 = vector.multi_reduction <add>, %14, %cst_11 [1] : vector<16x128xf32> to vector<16xf32>
    %16 = vector.shape_cast %15 : vector<16xf32> to vector<16x1xf32>
    %cst_12 = arith.constant 1.000000e-24 : f32
    %17 = vector.broadcast %cst_12 : f32 to vector<16x1xf32>
    %18 = arith.maximumf %16, %17 : vector<16x1xf32>
    %19 = math.rsqrt %18 : vector<16x1xf32>
    %20 = vector.broadcast %19 : vector<16x1xf32> to vector<16x128xf32>
    %21 = arith.mulf %13, %20 : vector<16x128xf32>
    %c0_13 = arith.constant 0 : index
    %c0_14 = arith.constant 0 : index
    %22 = vector.load %arg6[%c0_13, %c0_14] : memref<16x128xf32, #tpu.memory_space<vmem>>, vector<16x128xf32>
    tpu.vector_store %arg6[%c0_13, %c0_14], %21 {strides = array<i32>} : memref<16x128xf32, #tpu.memory_space<vmem>>, vector<16x128xf32>,
    return
  }
  func.func @transform_0(%arg0: i32) -> (i32, i32) {
    %c0_i32 = arith.constant 0 : i32
    %c0_i32_0 = arith.constant 0 : i32
    return %arg0, %c0_i32 : i32, i32
  }
  func.func @transform_1(%arg0: i32) -> (i32, i32) {
    %c0_i32 = arith.constant 0 : i32
    %c0_i32_0 = arith.constant 0 : i32
    %c0_i32_1 = arith.constant 0 : i32
    return %c0_i32, %c0_i32_0 : i32, i32
  }
  func.func @transform_2(%arg0: i32) -> (i32, i32) {
    %c0_i32 = arith.constant 0 : i32
    %c0_i32_0 = arith.constant 0 : i32
    %c0_i32_1 = arith.constant 0 : i32
    return %c0_i32, %c0_i32_0 : i32, i32
  }
  func.func @transform_3(%arg0: i32) -> (i32, i32) {
    %c0_i32 = arith.constant 0 : i32
    %c0_i32_0 = arith.constant 0 : i32
    %c0_i32_1 = arith.constant 0 : i32
    return %c0_i32, %c0_i32_0 : i32, i32
  }
  func.func @transform_4(%arg0: i32) -> (i32, i32) {
    %c0_i32 = arith.constant 0 : i32
    %c0_i32_0 = arith.constant 0 : i32
    %c0_i32_1 = arith.constant 0 : i32
    return %c0_i32, %c0_i32_0 : i32, i32
  }
  func.func @transform_5(%arg0: i32) -> (i32, i32) {
    %c0_i32 = arith.constant 0 : i32
    %c0_i32_0 = arith.constant 0 : i32
    return %arg0, %c0_i32 : i32, i32
  }
}

</mosaic_0001>

<bundles_post_ra>
// kernel: tpu_custom_call.1
= control target key start
LH: loop header
LB: loop body
LE: loop exit
PB: predicated region body
PF: predicated region fallthrough
CT: control target
= control target key end

     0   :  { %v395_v1 = vmov 0.0   ;;  %vm64_vm0 = vcmask 261120   ;;  %vm396_vm1 = vmmov 0   ;;  %vm187_vm2 = vcmask 523264   ;;  %s501_s0 = inlined_call_operand.vmem [shape: bf16[16,32], index: 0, kind: input, shape index: {}]   ;;  %s502_s1 = inlined_call_operand.vmem [shape: bf16[64,32], index: 1, kind: input, shape index: {}]   ;;  %s503_s2 = inlined_call_operand.vmem [shape: f32[1,64], index: 2, kind: input, shape index: {}]   ;;  %s504_s3 = inlined_call_operand.vmem [shape: bf16[128,64], index: 3, kind: input, shape index: {}]   ;;  %s505_s4 = inlined_call_operand.vmem [shape: f32[1,128], index: 4, kind: input, shape index: {}]   ;;  %s506_s5 = inlined_call_operand.hbm [shape: f32[16,128], index: 5, kind: output, shape index: {}]  }
   0x1   :  { %v354_v0 = vld [vmem:[%s502_s1] sm:$0xff]   ;;  %317 = vmatprep.subr.bf16.mxu0 %v395_v1  ;;  %329 = vmatprep.subr.bf16.mxu1 %v395_v1  ;;  %v355_v3 = vld [vmem:[%s502_s1 + $0x8] sm:$0xff]   ;;  %v356_v8 = vld [vmem:[%s502_s1 + $0x10] sm:$0xff]  }
   0x2   :  { %v69_v2 = vsel %vm64_vm0, %v354_v0, 0  ;;  %325 = vmatprep.mubr.msk.bf16.mxu0 %vm396_vm1, %v395_v1  ;;  %345 = vmatprep.mubr.msk.bf16.mxu1 %vm396_vm1, %v395_v1  ;;  %v359_v4 = vld [vmem:[%s504_s3] sm:$0xff]   ;;  %v72_v5 = vsel %vm64_vm0, %v355_v3, 0  ;;  %v360_v7 = vld [vmem:[%s504_s3 + $0x8] sm:$0xff]  }
   0x3   :  { %318 = vmatpush3.bf16.xpose.msra.mxu0 %v69_v2  ;;  %v192_v6 = vsel %vm187_vm2, %v359_v4, 0 }
   0x4   :  { %319 = vmatprep.subr.bf16.mxu0 %v395_v1  ;;  %330 = vmatpush3.bf16.xpose.msra.mxu1 %v192_v6 }
   0x5   :  { %331 = vmatprep.subr.bf16.mxu1 %v395_v1 }
   0xb   :  { %320 = vmatpush3.bf16.xpose.msra.mxu0 %v72_v5 }
   0xc   :  { %321 = vmatprep.subr.bf16.mxu0 %v395_v1 }
   0xd   :  { %10 = vsyncpa [#allocation3], 0  ;;  %v195_v9 = vsel %vm187_vm2, %v360_v7, 0  ;;  %v75_v10 = vsel %vm64_vm0, %v356_v8, 0  ;;  %v361_v11 = vld [vmem:[%s504_s3 + $0x10] sm:$0xff]   ;;  %v357_v12 = vld [vmem:[%s502_s1 + $0x18] sm:$0xff]  }
   0xe   :  { %332 = vmatpush3.bf16.xpose.msra.mxu1 %v195_v9  ;;  %v198_v13 = vsel %vm187_vm2, %v361_v11, 0  ;;  %v78_v14 = vsel %vm64_vm0, %v357_v12, 0  ;;  %v362_v15 = vld [vmem:[%s504_s3 + $0x18] sm:$0xff]   ;;  %v358_v16 = vld [vmem:[%s501_s0] sm:$0xff]   ;;  %v364_v20 = vld [vmem:[%s504_s3 + $0x28] sm:$0xff]  }
   0xf   :  { %333 = vmatprep.subr.bf16.mxu1 %v395_v1  ;;  %v201_v17 = vsel %vm187_vm2, %v362_v15, 0  ;;  %v363_v18 = vld [vmem:[%s504_s3 + $0x20] sm:$0xff]   ;;  %v207_v21 = vsel %vm187_vm2, %v364_v20, 0  ;;  %v365_v22 = vld [vmem:[%s504_s3 + $0x30] sm:$0xff]   ;;  %v366_v24 = vld [vmem:[%s504_s3 + $0x38] sm:$0xff]  }
  0x10   :  { %v204_v19 = vsel %vm187_vm2, %v363_v18, 0  ;;  %v210_v23 = vsel %vm187_vm2, %v365_v22, 0  ;;  %v213_v25 = vsel %vm187_vm2, %v366_v24, 0  ;;  %v286_v26 = vld [vmem:[%s503_s2] ss:$0 sm:$0xff]  ;;  %s397_s2 = smov [#allocation2]  }
  0x11   :  { %v293_v36 = vld [vmem:[%s505_s4] ss:$0 sm:$0xff]  ;;  %s275_s4 = sshll.u32 %s397_s2, 4  ;;  %s276_s4 = int_to_ptr.vmem [resolvable:$true] %s275_s4 }
  0x12   :  { %s371_s20 = scalar_lea.vmem %s276_s4, 256  ;;  %p376_p1 = scmp.lt.s32.totalorder %s276_s4, %s276_s4 }
  0x13   :  { %322 = vmatpush3.bf16.xpose.msra.mxu0 %v75_v10  ;;  %p372_p0 = scmp.ne.s32.totalorder %s276_s4, %s371_s20  ;;  %p377_p2 = scmp.lt.s32.totalorder %s371_s20, %s371_s20 }
  0x14   :  { %323 = vmatprep.subr.bf16.mxu0 %v395_v1 }
  0x15   :  { %p378_p3 = por %p377_p2, %p376_p1 }
  0x16   :  { %334 = vmatpush3.bf16.xpose.msra.mxu1 %v198_v13 }
  0x17   :  { %335 = vmatprep.subr.bf16.mxu1 %v395_v1  ;;  %p379_p4 = pnand %p378_p3, %p372_p0 }
  0x1b   :  { %324 = vmatpush3.bf16.xpose.msra.mxu0 %v78_v14 }
  0x1e   :  { %336 = vmatpush3.bf16.xpose.msra.mxu1 %v201_v17 }
  0x1f   :  { %337 = vmatprep.subr.bf16.mxu1 %v395_v1 }
  0x22   :  { %326 = vmatmul.mubr.msk.bf16.vlgmr.msra.gmra.mrb[0].mxu0 %vm64_vm0, %v358_v16 }
  0x26   :  { %338 = vmatpush3.bf16.xpose.msra.mxu1 %v204_v19 }
  0x27   :  { %339 = vmatprep.subr.bf16.mxu1 %v395_v1 }
  0x2e   :  { %340 = vmatpush3.bf16.xpose.msra.mxu1 %v207_v21 }
  0x2f   :  { %341 = vmatprep.subr.bf16.mxu1 %v395_v1 }
  0x36   :  { %342 = vmatpush3.bf16.xpose.msra.mxu1 %v210_v23 }
  0x37   :  { %343 = vmatprep.subr.bf16.mxu1 %v395_v1 }
  0x3e   :  { %344 = vmatpush3.bf16.xpose.msra.mxu1 %v213_v25 }
  0xf5   :  { %v114_v27 = vpop.f32.mrb[0].mxu0 }
  0xf6   :  { %v115_v28 = vadd.f32 %v286_v26, %v114_v27  ;;  %v327_v29 = vpop.f32.mrb[1].mxu0 }
  0xf7   :  { %v117_v30 = vpop.f32.mrb[2].mxu0 }
  0xf8   :  { %v118_v31 = vadd.f32 %v286_v26, %v117_v30  ;;  %v328_v32 = vpop.f32.mrb[3].mxu0  ;;  %v121_v33 = vmax.f32 %v115_v28, 0.0 }
  0xfa   :  { %v122_v34 = vmax.f32 %v118_v31, 0.0 }
  0xfc   :  { %v123_v35 = vpack.c.bf16 %v122_v34, %v121_v33 }
  0xfe   :  { %346 = vmatmul.mubr.msk.bf16.vlgmr.msra.gmra.mrb[0].mxu1 %vm187_vm2, %v123_v35 }
 0x1d1   :  { %v249_v37 = vpop.f32.mrb[0].mxu1 }
 0x1d2   :  { %v250_v38 = vadd.f32 %v293_v36, %v249_v37  ;;  %v347_v39 = vpop.f32.mrb[1].mxu1 }
 0x1d3   :  { %v252_v40 = vpop.f32.mrb[2].mxu1 }
 0x1d4   :  { %v253_v41 = vadd.f32 %v293_v36, %v252_v40  ;;  %v348_v42 = vpop.f32.mrb[3].mxu1  ;;  %v256_v43 = vmul.f32 %v250_v38, %v250_v38 }
 0x1d6   :  { %258 = vadd.xlane.f32.xlu0 %v256_v43  ;;  %v257_v44 = vmul.f32 %v253_v41, %v253_v41 }
 0x1da   :  { %260 = vadd.xlane.f32.xlu0 %v257_v44 }
 0x263   :  { %v259_v45 = vpop.xlane.xlu0 %258 }
 0x264   :  { %v262_v46 = vmax.f32 %v259_v45, 1e-24 }
 0x266   :  { %367 = vrsqrt.f32 %v262_v46 }
 0x267   :  { %v261_v47 = vpop.xlane.xlu0 %260 }
 0x268   :  { %v263_v48 = vmax.f32 %v261_v47, 1e-24 }
 0x26a   :  { %369 = vrsqrt.f32 %v263_v48 }
 0x270   :  { %v368_v49 = vpop.eup %367 }
 0x271   :  { %v266_v50 = vmul.f32 %v368_v49, %v250_v38 }
 0x273   :  { %268 = vst [vmem:[#allocation2] sm:$0xff] %v266_v50 }
 0x274   :  { %v370_v51 = vpop.eup %369 }
 0x275   :  { %v267_v52 = vmul.f32 %v370_v51, %v253_v41 }
 0x277   :  { %269 = vst [vmem:[#allocation2 + $0x8] sm:$0xff] %v267_v52 }
 0x278   :  { %382 = shalt.err (!%p379_p4)
}
 0x279   :  { %s383_s23 = scalar_lea.hbm %s506_s5, 256 }
 0x27a   :  { %p384_p5 = scmp.ne.s32.totalorder %s506_s5, %s383_s23  ;;  %p387_p6 = scmp.lt.u32.totalorder %s383_s23, %s506_s5 }
 0x27c   :  { %p389_p7 = pnand %p387_p6, %p384_p5 }
 0x27e   :  { %392 = shalt.err (!%p389_p7)
}
 0x27f   :  { %s398_s28 = smov 128   ;;  %s399_s29 = smov 8  }
 0x280   :  { %281 = dma.vmem_to_hbm [thread:$0]  %s276_s4, 256, %s506_s5, [#allocation3], %s398_s28, %s398_s28, %s399_s29  }
 0x281   :  { %393 = dma.done.wait [#allocation3], 256  }
 0x282   :  { %394 = vsyncadd [#allocation3], 4294967040 }
 0x283   :  { %285 = vsyncpa [#allocation3], 1 }

// kernel: tpu_custom_call.1
= control target key start
LH: loop header
LB: loop body
LE: loop exit
PB: predicated region body
PF: predicated region fallthrough
CT: control target
= control target key end

     0   :  { %v395_v1 = vmov 0.0   ;;  %vm64_vm0 = vcmask 261120   ;;  %vm396_vm1 = vmmov 0   ;;  %vm187_vm2 = vcmask 523264   ;;  %s501_s0 = inlined_call_operand.vmem [shape: bf16[16,32], index: 0, kind: input, shape index: {}]   ;;  %s502_s1 = inlined_call_operand.vmem [shape: bf16[64,32], index: 1, kind: input, shape index: {}]   ;;  %s503_s2 = inlined_call_operand.vmem [shape: f32[1,64], index: 2, kind: input, shape index: {}]   ;;  %s504_s3 = inlined_call_operand.vmem [shape: bf16[128,64], index: 3, kind: input, shape index: {}]   ;;  %s505_s4 = inlined_call_operand.vmem [shape: f32[1,128], index: 4, kind: input, shape index: {}]   ;;  %s506_s5 = inlined_call_operand.hbm [shape: f32[16,128], index: 5, kind: output, shape index: {}]  }
   0x1   :  { %v354_v0 = vld [vmem:[%s502_s1] sm:$0xff]   ;;  %317 = vmatprep.subr.bf16.mxu0 %v395_v1  ;;  %329 = vmatprep.subr.bf16.mxu1 %v395_v1  ;;  %v355_v3 = vld [vmem:[%s502_s1 + $0x8] sm:$0xff]   ;;  %v356_v8 = vld [vmem:[%s502_s1 + $0x10] sm:$0xff]  }
   0x2   :  { %v69_v2 = vsel %vm64_vm0, %v354_v0, 0  ;;  %325 = vmatprep.mubr.msk.bf16.mxu0 %vm396_vm1, %v395_v1  ;;  %345 = vmatprep.mubr.msk.bf16.mxu1 %vm396_vm1, %v395_v1  ;;  %v359_v4 = vld [vmem:[%s504_s3] sm:$0xff]   ;;  %v72_v5 = vsel %vm64_vm0, %v355_v3, 0  ;;  %v360_v7 = vld [vmem:[%s504_s3 + $0x8] sm:$0xff]  }
   0x3   :  { %318 = vmatpush3.bf16.xpose.msra.mxu0 %v69_v2  ;;  %v192_v6 = vsel %vm187_vm2, %v359_v4, 0 }
   0x4   :  { %319 = vmatprep.subr.bf16.mxu0 %v395_v1  ;;  %330 = vmatpush3.bf16.xpose.msra.mxu1 %v192_v6 }
   0x5   :  { %331 = vmatprep.subr.bf16.mxu1 %v395_v1 }
   0xb   :  { %320 = vmatpush3.bf16.xpose.msra.mxu0 %v72_v5 }
   0xc   :  { %321 = vmatprep.subr.bf16.mxu0 %v395_v1 }
   0xd   :  { %10 = vsyncpa [#allocation3], 0  ;;  %v195_v9 = vsel %vm187_vm2, %v360_v7, 0  ;;  %v75_v10 = vsel %vm64_vm0, %v356_v8, 0  ;;  %v361_v11 = vld [vmem:[%s504_s3 + $0x10] sm:$0xff]   ;;  %v357_v12 = vld [vmem:[%s502_s1 + $0x18] sm:$0xff]  }
   0xe   :  { %332 = vmatpush3.bf16.xpose.msra.mxu1 %v195_v9  ;;  %v198_v13 = vsel %vm187_vm2, %v361_v11, 0  ;;  %v78_v14 = vsel %vm64_vm0, %v357_v12, 0  ;;  %v362_v15 = vld [vmem:[%s504_s3 + $0x18] sm:$0xff]   ;;  %v358_v16 = vld [vmem:[%s501_s0] sm:$0xff]   ;;  %v364_v20 = vld [vmem:[%s504_s3 + $0x28] sm:$0xff]  }
   0xf   :  { %333 = vmatprep.subr.bf16.mxu1 %v395_v1  ;;  %v201_v17 = vsel %vm187_vm2, %v362_v15, 0  ;;  %v363_v18 = vld [vmem:[%s504_s3 + $0x20] sm:$0xff]   ;;  %v207_v21 = vsel %vm187_vm2, %v364_v20, 0  ;;  %v365_v22 = vld [vmem:[%s504_s3 + $0x30] sm:$0xff]   ;;  %v366_v24 = vld [vmem:[%s504_s3 + $0x38] sm:$0xff]  }
  0x10   :  { %v204_v19 = vsel %vm187_vm2, %v363_v18, 0  ;;  %v210_v23 = vsel %vm187_vm2, %v365_v22, 0  ;;  %v213_v25 = vsel %vm187_vm2, %v366_v24, 0  ;;  %v286_v26 = vld [vmem:[%s503_s2] ss:$0 sm:$0xff]  ;;  %s397_s2 = smov [#allocation2]  }
  0x11   :  { %v293_v36 = vld [vmem:[%s505_s4] ss:$0 sm:$0xff]  ;;  %s275_s4 = sshll.u32 %s397_s2, 4  ;;  %s276_s4 = int_to_ptr.vmem [resolvable:$true] %s275_s4 }
  0x12   :  { %s371_s20 = scalar_lea.vmem %s276_s4, 256  ;;  %p376_p1 = scmp.lt.s32.totalorder %s276_s4, %s276_s4 }
  0x13   :  { %322 = vmatpush3.bf16.xpose.msra.mxu0 %v75_v10  ;;  %p372_p0 = scmp.ne.s32.totalorder %s276_s4, %s371_s20  ;;  %p377_p2 = scmp.lt.s32.totalorder %s371_s20, %s371_s20 }
  0x14   :  { %323 = vmatprep.subr.bf16.mxu0 %v395_v1 }
  0x15   :  { %p378_p3 = por %p377_p2, %p376_p1 }
  0x16   :  { %334 = vmatpush3.bf16.xpose.msra.mxu1 %v198_v13 }
  0x17   :  { %335 = vmatprep.subr.bf16.mxu1 %v395_v1  ;;  %p379_p4 = pnand %p378_p3, %p372_p0 }
  0x1b   :  { %324 = vmatpush3.bf16.xpose.msra.mxu0 %v78_v14 }
  0x1e   :  { %336 = vmatpush3.bf16.xpose.msra.mxu1 %v201_v17 }
  0x1f   :  { %337 = vmatprep.subr.bf16.mxu1 %v395_v1 }
  0x22   :  { %326 = vmatmul.mubr.msk.bf16.vlgmr.msra.gmra.mrb[0].mxu0 %vm64_vm0, %v358_v16 }
  0x26   :  { %338 = vmatpush3.bf16.xpose.msra.mxu1 %v204_v19 }
  0x27   :  { %339 = vmatprep.subr.bf16.mxu1 %v395_v1 }
  0x2e   :  { %340 = vmatpush3.bf16.xpose.msra.mxu1 %v207_v21 }
  0x2f   :  { %341 = vmatprep.subr.bf16.mxu1 %v395_v1 }
  0x36   :  { %342 = vmatpush3.bf16.xpose.msra.mxu1 %v210_v23 }
  0x37   :  { %343 = vmatprep.subr.bf16.mxu1 %v395_v1 }
  0x3e   :  { %344 = vmatpush3.bf16.xpose.msra.mxu1 %v213_v25 }
  0xf5   :  { %v114_v27 = vpop.f32.mrb[0].mxu0 }
  0xf6   :  { %v115_v28 = vadd.f32 %v286_v26, %v114_v27  ;;  %v327_v29 = vpop.f32.mrb[1].mxu0 }
  0xf7   :  { %v117_v30 = vpop.f32.mrb[2].mxu0 }
  0xf8   :  { %v118_v31 = vadd.f32 %v286_v26, %v117_v30  ;;  %v328_v32 = vpop.f32.mrb[3].mxu0  ;;  %v121_v33 = vmax.f32 %v115_v28, 0.0 }
  0xfa   :  { %v122_v34 = vmax.f32 %v118_v31, 0.0 }
  0xfc   :  { %v123_v35 = vpack.c.bf16 %v122_v34, %v121_v33 }
  0xfe   :  { %346 = vmatmul.mubr.msk.bf16.vlgmr.msra.gmra.mrb[0].mxu1 %vm187_vm2, %v123_v35 }
 0x1d1   :  { %v249_v37 = vpop.f32.mrb[0].mxu1 }
 0x1d2   :  { %v250_v38 = vadd.f32 %v293_v36, %v249_v37  ;;  %v347_v39 = vpop.f32.mrb[1].mxu1 }
 0x1d3   :  { %v252_v40 = vpop.f32.mrb[2].mxu1 }
 0x1d4   :  { %v253_v41 = vadd.f32 %v293_v36, %v252_v40  ;;  %v348_v42 = vpop.f32.mrb[3].mxu1  ;;  %v256_v43 = vmul.f32 %v250_v38, %v250_v38 }
 0x1d6   :  { %258 = vadd.xlane.f32.xlu0 %v256_v43  ;;  %v257_v44 = vmul.f32 %v253_v41, %v253_v41 }
 0x1da   :  { %260 = vadd.xlane.f32.xlu0 %v257_v44 }
 0x263   :  { %v259_v45 = vpop.xlane.xlu0 %258 }
 0x264   :  { %v262_v46 = vmax.f32 %v259_v45, 1e-24 }
 0x266   :  { %367 = vrsqrt.f32 %v262_v46 }
 0x267   :  { %v261_v47 = vpop.xlane.xlu0 %260 }
 0x268   :  { %v263_v48 = vmax.f32 %v261_v47, 1e-24 }
 0x26a   :  { %369 = vrsqrt.f32 %v263_v48 }
 0x270   :  { %v368_v49 = vpop.eup %367 }
 0x271   :  { %v266_v50 = vmul.f32 %v368_v49, %v250_v38 }
 0x273   :  { %268 = vst [vmem:[#allocation2] sm:$0xff] %v266_v50 }
 0x274   :  { %v370_v51 = vpop.eup %369 }
 0x275   :  { %v267_v52 = vmul.f32 %v370_v51, %v253_v41 }
 0x277   :  { %269 = vst [vmem:[#allocation2 + $0x8] sm:$0xff] %v267_v52 }
 0x278   :  { %382 = shalt.err (!%p379_p4)
}
 0x279   :  { %s383_s23 = scalar_lea.hbm %s506_s5, 256 }
 0x27a   :  { %p384_p5 = scmp.ne.s32.totalorder %s506_s5, %s383_s23  ;;  %p387_p6 = scmp.lt.u32.totalorder %s383_s23, %s506_s5 }
 0x27c   :  { %p389_p7 = pnand %p387_p6, %p384_p5 }
 0x27e   :  { %392 = shalt.err (!%p389_p7)
}
 0x27f   :  { %s398_s28 = smov 128   ;;  %s399_s29 = smov 8  }
 0x280   :  { %281 = dma.vmem_to_hbm [thread:$0]  %s276_s4, 256, %s506_s5, [#allocation3], %s398_s28, %s398_s28, %s399_s29  }
 0x281   :  { %393 = dma.done.wait [#allocation3], 256  }
 0x282   :  { %394 = vsyncadd [#allocation3], 4294967040 }
 0x283   :  { %285 = vsyncpa [#allocation3], 1 }

</bundles_post_ra>
